<compile_context>
chip_gen: v5e
topology: v5e:2x2
jax: 0.10.0
libtpu: 0.0.40
codegen_flags: <defaults>
</compile_context>

<pallas_src>
import functools

import jax
import jax.numpy as jnp
from jax.experimental import pallas as pl
from jax.experimental.pallas import tpu as pltpu

STATE_DIM = 8     # LunarLander-v2 observation dim
HIDDEN = 128
ACTION_N = 4      # LunarLander-v2 action space
LANE = 128        # TPU lane width


def _round_up(v, m):
    return ((v + m - 1) // m) * m


# ----------------------------------------------------------------------------
# Kernels
# ----------------------------------------------------------------------------
def cem_mlp_kernel_packed(x_ref, w1_ref, b1_ref, w2t_ref, b2t_ref, o_ref, *, action_n):
    """Fused MLP with lane-dense packed logits.

    w2t/b2t are the 2nd-layer weights/bias tiled LANE//action_n times along the
    output axis, so column j of `lt` holds the logit of action (j % action_n).
    The store packs group = LANE // action_n batch rows per 128-lane output row:
        o[r, action_n*i + a] = logits[group*r + i, a]
    i.e. row-major (batch, action) order -> the wrapper un-pack is a pure
    metadata reshape.  The where-select is NaN-safe w.r.t. garbage rows coming
    from ragged edge blocks (they only pollute their own lanes).
    """
    x = x_ref[...].astype(w1_ref.dtype)                              # (tm, sd)
    h = jnp.dot(x, w1_ref[...], preferred_element_type=jnp.float32)
    h = jnp.maximum(h + b1_ref[...], 0.0)                            # f32 bias+ReLU (v5e-safe)
    lt = jnp.dot(h.astype(w2t_ref.dtype), w2t_ref[...],
                 preferred_element_type=jnp.float32) + b2t_ref[...]  # (tm, LANE)

    tm, lane = lt.shape
    group = lane // action_n                                         # 32 for action_n=4
    # sel[i, j] = (lane j belongs to sub-row i), built without integer division.
    sub = jax.lax.broadcasted_iota(jnp.int32, (group, lane), 0)
    lane_idx = jax.lax.broadcasted_iota(jnp.int32, (group, lane), 1)
    lo = sub * action_n
    sel = (lane_idx >= lo) & (lane_idx < lo + action_n)

    ltr = lt.reshape(tm // group, group, lane)                       # layout-preserving split
    packed = jnp.where(sel, ltr, 0.0).sum(axis=1)                    # (tm//group, lane), XLU reduce
    o_ref[...] = packed.astype(o_ref.dtype)


def cem_mlp_kernel_rowmajor(x_ref, w1_ref, b1_ref, w2_ref, b2_ref, o_ref):
    """Fallback: writes (tm, action_n) logits directly (narrow store, no padding)."""
    x = x_ref[...].astype(w1_ref.dtype)
    h = jnp.dot(x, w1_ref[...], preferred_element_type=jnp.float32)
    h = jnp.maximum(h + b1_ref[...], 0.0)
    out = jnp.dot(h.astype(w2_ref.dtype), w2_ref[...],
                  preferred_element_type=jnp.float32) + b2_ref[...]
    o_ref[...] = out.astype(o_ref.dtype)


# ----------------------------------------------------------------------------
# Parameter prep (one-time, hoisted out of the per-step forward)
# ----------------------------------------------------------------------------
def prepare_params(w1, b1, w2, b2, *, compute_dtype=jnp.bfloat16):
    """Cast matmul operands to compute_dtype (bf16 default: halves weight/x DMA
    streams, native MXU input width on v6e/v7x) and pre-tile w2/b2 for the
    lane-dense packed output path.  Biases stay f32; accumulation is f32."""
    sd, hid = w1.shape
    hid2, an = w2.shape
    assert hid == hid2
    params = dict(
        w1=jnp.asarray(w1).astype(compute_dtype),
        b1=jnp.asarray(b1).reshape(1, hid).astype(jnp.float32),
        w2=jnp.asarray(w2).astype(compute_dtype),
        b2=jnp.asarray(b2).reshape(1, an).astype(jnp.float32),
        state_dim=sd, hidden=hid, action_n=an,
    )
    if LANE % an == 0:
        reps = LANE // an
        params["w2_tiled"] = jnp.tile(jnp.asarray(w2), (1, reps)).astype(compute_dtype)
        params["b2_tiled"] = jnp.tile(jnp.asarray(b2).reshape(1, an), (1, reps)).astype(jnp.float32)
    return params


# ----------------------------------------------------------------------------
# Forward pass
# ----------------------------------------------------------------------------
def cem_forward(x, params, *, tm=None, out_dtype=jnp.float32,
                min_pallas_batch=128, max_tile=2048, packed=None):
    """logits = Linear(sd,128) -> ReLU -> Linear(128,action_n).

    x: (B, state_dim); returns (B, action_n) logits in out_dtype.
    """
    B, sd = x.shape
    assert sd == params["state_dim"]
    hid, an = params["hidden"], params["action_n"]
    w1, b1 = params["w1"], params["b1"]

    # --- tiny batches (get_action, B=1): XLA dense path, no kernel overhead.
    if B < min_pallas_batch:
        xc = x.astype(w1.dtype)
        h = jnp.maximum(jnp.dot(xc, w1, preferred_element_type=jnp.float32) + b1, 0.0)
        out = jnp.dot(h.astype(params["w2"].dtype), params["w2"],
                      preferred_element_type=jnp.float32) + params["b2"]
        return out.astype(out_dtype)

    if packed is None:
        packed = "w2_tiled" in params
    packed = packed and ("w2_tiled" in params)

    if packed:
        group = LANE // an
        w2k, b2k = params["w2_tiled"], params["b2_tiled"]
        n_out_cols = LANE
        kernel = functools.partial(cem_mlp_kernel_packed, action_n=an)
        tile_quant = group * 8     # packed out block (tm//group, 128) needs tm//group % 8 == 0
    else:
        group = 1
        w2k, b2k = params["w2"], params["b2"]
        n_out_cols = an
        kernel = cem_mlp_kernel_rowmajor
        tile_quant = 8

    # Batch tile: big tiles amortize ~0.35us/grid-step; >=2 tiles lets the
    # "parallel" axis shard over v7x's 2 TensorCores; cap keeps double-buffered
    # tiles far below even v5e's 16 MiB default scoped VMEM.
    if tm is None:
        tm = pl.cdiv(B, 2)
    tm = _round_up(max(tile_quant, min(int(tm), max_tile)), tile_quant)

    num_tiles = pl.cdiv(B, tm)
    out_rows = pl.cdiv(B, group)   # = B when unpacked

    x_isz = jnp.dtype(x.dtype).itemsize
    w_isz = jnp.dtype(w1.dtype).itemsize
    o_isz = jnp.dtype(out_dtype).itemsize
    flops = 2 * num_tiles * tm * (sd * hid + hid * n_out_cols)
    bytes_accessed = (B * sd * x_isz
                      + (sd * hid + hid * n_out_cols) * w_isz
                      + (hid + n_out_cols) * 4
                      + out_rows * n_out_cols * o_isz)

    out = pl.pallas_call(
        kernel,
        out_shape=jax.ShapeDtypeStruct((out_rows, n_out_cols), out_dtype),
        grid=(num_tiles,),
        in_specs=[
            pl.BlockSpec((tm, sd), lambda i: (i, 0)),             # x batch tile (ragged edge OK)
            pl.BlockSpec((sd, hid), lambda i: (0, 0)),            # w1   (resident)
            pl.BlockSpec((1, hid), lambda i: (0, 0)),             # b1   (resident)
            pl.BlockSpec((hid, n_out_cols), lambda i: (0, 0)),    # w2 / w2_tiled (resident)
            pl.BlockSpec((1, n_out_cols), lambda i: (0, 0)),      # b2 / b2_tiled (resident)
        ],
        out_specs=pl.BlockSpec((tm // group, n_out_cols), lambda i: (i, 0)),
        compiler_params=pltpu.CompilerParams(
            dimension_semantics=("parallel",)),
        cost_estimate=pl.CostEstimate(
            flops=flops, transcendentals=0, bytes_accessed=bytes_accessed),
    )(x, w1, b1, w2k, b2k)

    if packed:
        # metadata-only: packing is row-major (batch, action) order
        out = out.reshape(out_rows * group, an)
    return out[:B]


def init_params(key, state_dim=STATE_DIM, hidden=HIDDEN, action_n=ACTION_N):
    # deterministic synthetic init mimicking torch.nn.Linear's U(-1/sqrt(fan_in), .)
    k1, k2, k3, k4 = jax.random.split(key, 4)
    lim1 = 1.0 / jnp.sqrt(state_dim)
    lim2 = 1.0 / jnp.sqrt(hidden)
    w1 = jax.random.uniform(k1, (state_dim, hidden), jnp.float32, -lim1, lim1)
    b1 = jax.random.uniform(k2, (1, hidden), jnp.float32, -lim1, lim1)
    w2 = jax.random.uniform(k3, (hidden, action_n), jnp.float32, -lim2, lim2)
    b2 = jax.random.uniform(k4, (1, action_n), jnp.float32, -lim2, lim2)
    return w1, b1, w2, b2


if __name__ == "__main__":
    key = jax.random.PRNGKey(0)
    kp, kx1, kx2, kx3, kx4, kx5 = jax.random.split(key, 6)
    w1, b1, w2, b2 = init_params(kp)

    def ref_f32(x):
        return jnp.maximum(x @ w1 + b1, 0.0) @ w2 + b2

    def ref_bf16(x):
        h = jnp.dot(x.astype(jnp.bfloat16), w1.astype(jnp.bfloat16),
                    preferred_element_type=jnp.float32) + b1
        h = jnp.maximum(h, 0.0)
        return jnp.dot(h.astype(jnp.bfloat16), w2.astype(jnp.bfloat16),
                       preferred_element_type=jnp.float32) + b2

    params_f32 = prepare_params(w1, b1, w2, b2, compute_dtype=jnp.float32)
    params_bf16 = prepare_params(w1, b1, w2, b2, compute_dtype=jnp.bfloat16)

    # 1) tiny batch -> XLA dense dispatch (get_action-style)
    x1 = jax.random.normal(kx1, (1, STATE_DIM), jnp.float32)
    o1 = jax.block_until_ready(cem_forward(x1, params_f32))
    assert o1.shape == (1, ACTION_N)
    assert jnp.allclose(o1, ref_f32(x1), atol=1e-5, rtol=1e-5), "mismatch (tiny/XLA)"

    # 2) f32, packed lane-dense output, single tile (B multiple of 32)
    x2 = jax.random.normal(kx2, (256, STATE_DIM), jnp.float32)
    o2 = jax.block_until_ready(cem_forward(x2, params_f32))
    assert o2.shape == (256, ACTION_N)
    assert jnp.allclose(o2, ref_f32(x2), atol=1e-4, rtol=1e-4), "mismatch (packed f32)"

    # 3) f32, packed, ragged batch (not a multiple of tile or group), multi-tile grid
    x3 = jax.random.normal(kx3, (600, STATE_DIM), jnp.float32)
    o3 = jax.block_until_ready(cem_forward(x3, params_f32))
    assert o3.shape == (600, ACTION_N)
    assert jnp.allclose(o3, ref_f32(x3), atol=1e-4, rtol=1e-4), "mismatch (packed f32 ragged)"

    # 4) bf16 matmul inputs (default prep), packed, multi-tile
    x4 = jax.random.normal(kx4, (512, STATE_DIM), jnp.float32)
    o4 = jax.block_until_ready(cem_forward(x4, params_bf16))
    assert o4.shape == (512, ACTION_N)
    assert jnp.allclose(o4, ref_bf16(x4), atol=2e-2, rtol=2e-2), "mismatch (packed bf16)"

    # 5) fallback row-major (unpacked) output path
    x5 = jax.random.normal(kx5, (256, STATE_DIM), jnp.float32)
    o5 = jax.block_until_ready(cem_forward(x5, params_f32, packed=False))
    assert o5.shape == (256, ACTION_N)
    assert jnp.allclose(o5, ref_f32(x5), atol=1e-4, rtol=1e-4), "mismatch (unpacked f32)"

    print("KERNEL_OK")
</pallas_src>

<mosaic_0001>
module attributes {stable_mosaic.version = 11 : i64} {
  func.func @cem_mlp_kernel_packed(%arg0: i32, %arg1: memref<256x8xf32, #tpu.memory_space<vmem>>, %arg2: memref<8x128xf32, #tpu.memory_space<vmem>>, %arg3: memref<1x128xf32, #tpu.memory_space<vmem>>, %arg4: memref<128x128xf32, #tpu.memory_space<vmem>>, %arg5: memref<1x128xf32, #tpu.memory_space<vmem>>, %arg6: memref<8x128xf32, #tpu.memory_space<vmem>>) attributes {dimension_semantics = [#tpu.dimension_semantics<parallel>], iteration_bounds = array<i64: 1>, scalar_prefetch = 0 : i64, scratch_operands = 0 : i64, tpu.core_type = #tpu.core_type<tc>, window_params = [{transform_indices = @transform_0, window_bounds = array<i64: 256, 8>}, {pipeline_mode = #tpu.pipeline_mode<synchronous>, transform_indices = @transform_1, window_bounds = array<i64: 8, 128>}, {pipeline_mode = #tpu.pipeline_mode<synchronous>, transform_indices = @transform_2, window_bounds = array<i64: 1, 128>}, {pipeline_mode = #tpu.pipeline_mode<synchronous>, transform_indices = @transform_3, window_bounds = array<i64: 128, 128>}, {pipeline_mode = #tpu.pipeline_mode<synchronous>, transform_indices = @transform_4, window_bounds = array<i64: 1, 128>}, {transform_indices = @transform_5, window_bounds = array<i64: 8, 128>}]} {
    %c0 = arith.constant 0 : index
    %c0_0 = arith.constant 0 : index
    %0 = vector.load %arg1[%c0, %c0_0] : memref<256x8xf32, #tpu.memory_space<vmem>>, vector<256x8xf32>
    %c0_1 = arith.constant 0 : index
    %c0_2 = arith.constant 0 : index
    %1 = vector.load %arg2[%c0_1, %c0_2] : memref<8x128xf32, #tpu.memory_space<vmem>>, vector<8x128xf32>
    %cst = arith.constant dense<0.000000e+00> : vector<256x128xf32>
    %2 = tpu.matmul %0, %1, %cst {dimension_numbers = #tpu.dot_dimension_numbers<[1], [0], [0], [1], [0, 0, 1, 1], [], []>} : vector<256x8xf32>, vector<8x128xf32>, vector<256x128xf32> -> vector<256x128xf32>
    %c0_3 = arith.constant 0 : index
    %c0_4 = arith.constant 0 : index
    %3 = vector.load %arg3[%c0_3, %c0_4] : memref<1x128xf32, #tpu.memory_space<vmem>>, vector<1x128xf32>
    %4 = vector.broadcast %3 : vector<1x128xf32> to vector<256x128xf32>
    %5 = arith.addf %2, %4 : vector<256x128xf32>
    %cst_5 = arith.constant 0.000000e+00 : f32
    %6 = vector.broadcast %cst_5 : f32 to vector<256x128xf32>
    %7 = arith.maximumf %5, %6 : vector<256x128xf32>
    %c0_6 = arith.constant 0 : index
    %c0_7 = arith.constant 0 : index
    %8 = vector.load %arg4[%c0_6, %c0_7] : memref<128x128xf32, #tpu.memory_space<vmem>>, vector<128x128xf32>
    %cst_8 = arith.constant dense<0.000000e+00> : vector<256x128xf32>
    %9 = tpu.matmul %7, %8, %cst_8 {dimension_numbers = #tpu.dot_dimension_numbers<[1], [0], [0], [1], [0, 0, 1, 1], [], []>} : vector<256x128xf32>, vector<128x128xf32>, vector<256x128xf32> -> vector<256x128xf32>
    %c0_9 = arith.constant 0 : index
    %c0_10 = arith.constant 0 : index
    %10 = vector.load %arg5[%c0_9, %c0_10] : memref<1x128xf32, #tpu.memory_space<vmem>>, vector<1x128xf32>
    %11 = vector.broadcast %10 : vector<1x128xf32> to vector<256x128xf32>
    %12 = arith.addf %9, %11 : vector<256x128xf32>
    %13 = tpu.iota {dimensions = array<i32: 0>} : vector<32x128xi32>
    %14 = tpu.iota {dimensions = array<i32: 1>} : vector<32x128xi32>
    %c4_i32 = arith.constant 4 : i32
    %15 = vector.broadcast %c4_i32 : i32 to vector<32x128xi32>
    %16 = arith.muli %13, %15 : vector<32x128xi32>
    %17 = arith.cmpi sge, %14, %16 : vector<32x128xi32>
    %c4_i32_11 = arith.constant 4 : i32
    %18 = vector.broadcast %c4_i32_11 : i32 to vector<32x128xi32>
    %19 = arith.addi %16, %18 : vector<32x128xi32>
    %20 = arith.cmpi slt, %14, %19 : vector<32x128xi32>
    %21 = arith.andi %17, %20 : vector<32x128xi1>
    %22 = vector.shape_cast %12 : vector<256x128xf32> to vector<8x32x128xf32>
    %cst_12 = arith.constant 0.000000e+00 : f32
    %23 = vector.shape_cast %21 : vector<32x128xi1> to vector<1x32x128xi1>
    %24 = vector.broadcast %23 : vector<1x32x128xi1> to vector<8x32x128xi1>
    %25 = vector.broadcast %cst_12 : f32 to vector<8x32x128xf32>
    %26 = arith.select %24, %22, %25 : vector<8x32x128xi1>, vector<8x32x128xf32>
    %cst_13 = arith.constant dense<0.000000e+00> : vector<8x128xf32>
    %27 = vector.multi_reduction <add>, %26, %cst_13 [1] : vector<8x32x128xf32> to vector<8x128xf32>
    %c0_14 = arith.constant 0 : index
    %c0_15 = arith.constant 0 : index
    %28 = vector.load %arg6[%c0_14, %c0_15] : memref<8x128xf32, #tpu.memory_space<vmem>>, vector<8x128xf32>
    tpu.vector_store %arg6[%c0_14, %c0_15], %27 {strides = array<i32>} : memref<8x128xf32, #tpu.memory_space<vmem>>, vector<8x128xf32>,
    return
  }
  func.func @transform_0(%arg0: i32) -> (i32, i32) {
    %c0_i32 = arith.constant 0 : i32
    %c0_i32_0 = arith.constant 0 : i32
    return %arg0, %c0_i32 : i32, i32
  }
  func.func @transform_1(%arg0: i32) -> (i32, i32) {
    %c0_i32 = arith.constant 0 : i32
    %c0_i32_0 = arith.constant 0 : i32
    %c0_i32_1 = arith.constant 0 : i32
    return %c0_i32, %c0_i32_0 : i32, i32
  }
  func.func @transform_2(%arg0: i32) -> (i32, i32) {
    %c0_i32 = arith.constant 0 : i32
    %c0_i32_0 = arith.constant 0 : i32
    %c0_i32_1 = arith.constant 0 : i32
    return %c0_i32, %c0_i32_0 : i32, i32
  }
  func.func @transform_3(%arg0: i32) -> (i32, i32) {
    %c0_i32 = arith.constant 0 : i32
    %c0_i32_0 = arith.constant 0 : i32
    %c0_i32_1 = arith.constant 0 : i32
    return %c0_i32, %c0_i32_0 : i32, i32
  }
  func.func @transform_4(%arg0: i32) -> (i32, i32) {
    %c0_i32 = arith.constant 0 : i32
    %c0_i32_0 = arith.constant 0 : i32
    %c0_i32_1 = arith.constant 0 : i32
    return %c0_i32, %c0_i32_0 : i32, i32
  }
  func.func @transform_5(%arg0: i32) -> (i32, i32) {
    %c0_i32 = arith.constant 0 : i32
    %c0_i32_0 = arith.constant 0 : i32
    return %arg0, %c0_i32 : i32, i32
  }
}

</mosaic_0001>

<bundles_post_ra>
// kernel: tpu_custom_call.1
= control target key start
LH: loop header
LB: loop body
LE: loop exit
PB: predicated region body
PF: predicated region fallthrough
CT: control target
= control target key end

     0   :  { %vm58_vm0 = vcmask 64512   ;;  %s1103_s0 = inlined_call_operand.vmem [shape: f32[256,8], index: 0, kind: input, shape index: {}]   ;;  %s1104_s1 = inlined_call_operand.vmem [shape: f32[8,128], index: 1, kind: input, shape index: {}]   ;;  %s1105_s2 = inlined_call_operand.vmem [shape: f32[1,128], index: 2, kind: input, shape index: {}]   ;;  %s1106_s3 = inlined_call_operand.vmem [shape: f32[128,128], index: 3, kind: input, shape index: {}]   ;;  %s1107_s4 = inlined_call_operand.vmem [shape: f32[1,128], index: 4, kind: input, shape index: {}]   ;;  %s1108_s5 = inlined_call_operand.hbm [shape: f32[8,128], index: 5, kind: output, shape index: {}]  }
   0x1   :  { %v53_v0 = vld [vmem:[%s1104_s1] sm:$0xff] }
   0x2   :  { %v21_v1 = vld [vmem:[%s1103_s0] sm:$0xff]  ;;  %170 = vmatpush.msra.mxu0 %v53_v0  ;;  %644 = vmatpush.msra.mxu3 %v53_v0 }
   0x3   :  { %612 = vmatmul.msk.f32.vlgmr.msra.gmra.mxu0 %vm58_vm0, %v21_v1 }
   0x4   :  { %10 = vsyncpa [#allocation3], 0  ;;  %v22_v2 = vld [vmem:[%s1103_s0 + $0x8] sm:$0xff]  ;;  %v23_v3 = vld [vmem:[%s1103_s0 + $0x10] sm:$0xff]  ;;  %vm580_vm13 = vcmask 1041409   ;;  %vm582_vm14 = vcmask 1042434  }
   0x5   :  { %v24_v4 = vld [vmem:[%s1103_s0 + $0x18] sm:$0xff]  ;;  %v25_v5 = vld [vmem:[%s1103_s0 + $0x20] sm:$0xff]  ;;  %v26_v6 = vld [vmem:[%s1103_s0 + $0x28] sm:$0xff]  ;;  %vm584_vm15 = vcmask 1043459   ;;  %s603_s15 = sshll.u32 %s1108_s5, 4  ;;  %s604_s15 = int_to_ptr.hbm [resolvable:$true] %s603_s15 }
   0x6   :  { %v27_v7 = vld [vmem:[%s1103_s0 + $0x30] sm:$0xff]  ;;  %v28_v8 = vld [vmem:[%s1103_s0 + $0x38] sm:$0xff]  ;;  %v29_v9 = vld [vmem:[%s1103_s0 + $0x40] sm:$0xff] }
   0x7   :  { %v315_v10 = vld [vmem:[%s1106_s3 + $0x78] sm:$0xff]  ;;  %v314_v11 = vld [vmem:[%s1106_s3 + $0x70] sm:$0xff]  ;;  %v313_v12 = vld [vmem:[%s1106_s3 + $0x68] sm:$0xff] }
   0x8   :  { %320 = vmatpush.msra.mxu1 %v315_v10  ;;  %645 = vmatpush.msra.mxu2 %v315_v10  ;;  %v30_v13 = vld [vmem:[%s1103_s0 + $0x48] sm:$0xff]  ;;  %v312_v14 = vld [vmem:[%s1106_s3 + $0x60] sm:$0xff]  ;;  %v311_v15 = vld [vmem:[%s1106_s3 + $0x58] sm:$0xff] }
   0x9   :  { %646 = vmatpush.msrb.mxu3 %v315_v10  ;;  %v310_v16 = vld [vmem:[%s1106_s3 + $0x50] sm:$0xff]  ;;  %v309_v17 = vld [vmem:[%s1106_s3 + $0x48] sm:$0xff]  ;;  %v308_v19 = vld [vmem:[%s1106_s3 + $0x40] sm:$0xff] }
   0xa   :  { %321 = vmatpush.msra.mxu1 %v314_v11  ;;  %647 = vmatpush.msra.mxu2 %v314_v11  ;;  %v31_v18 = vld [vmem:[%s1103_s0 + $0x50] sm:$0xff]  ;;  %v307_v20 = vld [vmem:[%s1106_s3 + $0x38] sm:$0xff]  ;;  %v305_v23 = vld [vmem:[%s1106_s3 + $0x28] sm:$0xff] }
   0xb   :  { %613 = vmatmul.msk.f32.gmra.mxu0 %vm58_vm0, %v22_v2  ;;  %648 = vmatpush.msrb.mxu3 %v314_v11  ;;  %v39_v21 = vld [vmem:[%s1103_s0 + $0x90] sm:$0xff]  ;;  %v32_v24 = vld [vmem:[%s1103_s0 + $0x58] sm:$0xff]  ;;  %v304_v25 = vld [vmem:[%s1106_s3 + $0x20] sm:$0xff] }
   0xc   :  { %322 = vmatpush.msra.mxu1 %v313_v12  ;;  %649 = vmatpush.msra.mxu2 %v313_v12  ;;  %v306_v22 = vld [vmem:[%s1106_s3 + $0x30] sm:$0xff]  ;;  %v303_v26 = vld [vmem:[%s1106_s3 + $0x18] sm:$0xff]  ;;  %v33_v28 = vld [vmem:[%s1103_s0 + $0x60] sm:$0xff] }
   0xd   :  { %650 = vmatpush.msrb.mxu3 %v313_v12  ;;  %v302_v27 = vld [vmem:[%s1106_s3 + $0x10] sm:$0xff]  ;;  %v40_v29 = vld [vmem:[%s1103_s0 + $0x98] sm:$0xff]  ;;  %v301_v30 = vld [vmem:[%s1106_s3 + $0x8] sm:$0xff] }
   0xe   :  { %323 = vmatpush.msra.mxu1 %v312_v14  ;;  %651 = vmatpush.msra.mxu2 %v312_v14  ;;  %v300_v31 = vld [vmem:[%s1106_s3] sm:$0xff]  ;;  %v34_v32 = vld [vmem:[%s1103_s0 + $0x68] sm:$0xff]  ;;  %v35_v34 = vld [vmem:[%s1103_s0 + $0x70] sm:$0xff] }
   0xf   :  { %652 = vmatpush.msrb.mxu3 %v312_v14  ;;  %v41_v33 = vld [vmem:[%s1103_s0 + $0xa0] sm:$0xff]  ;;  %v42_v35 = vld [vmem:[%s1103_s0 + $0xa8] sm:$0xff]  ;;  %v36_v36 = vld [vmem:[%s1103_s0 + $0x78] sm:$0xff] }
  0x10   :  { %324 = vmatpush.msra.mxu1 %v311_v15  ;;  %653 = vmatpush.msra.mxu2 %v311_v15  ;;  %v43_v37 = vld [vmem:[%s1103_s0 + $0xb0] sm:$0xff]  ;;  %v875_v38 = vld [vmem:[%s1105_s2] ss:$0 sm:$0xff]  ;;  %v44_v41 = vld [vmem:[%s1103_s0 + $0xb8] sm:$0xff] }
  0x11   :  { %654 = vmatpush.msrb.mxu3 %v311_v15  ;;  %v37_v40 = vld [vmem:[%s1103_s0 + $0x80] sm:$0xff]  ;;  %v38_v45 = vld [vmem:[%s1103_s0 + $0x88] sm:$0xff]  ;;  %v47_v54 = vld [vmem:[%s1103_s0 + $0xd0] sm:$0xff] }
  0x12   :  { %325 = vmatpush.msra.mxu1 %v310_v16  ;;  %655 = vmatpush.msra.mxu2 %v310_v16  ;;  %v45_v46 = vld [vmem:[%s1103_s0 + $0xc0] sm:$0xff]  ;;  %v46_v50 = vld [vmem:[%s1103_s0 + $0xc8] sm:$0xff]  ;;  %v48_v58 = vld [vmem:[%s1103_s0 + $0xd8] sm:$0xff] }
  0x13   :  { %614 = vmatmul.msk.f32.gmra.mxu0 %vm58_vm0, %v23_v3  ;;  %656 = vmatpush.msrb.mxu3 %v310_v16  ;;  %v49_v62 = vld [vmem:[%s1103_s0 + $0xe0] sm:$0xff]  ;;  %v50_v2 = vld [vmem:[%s1103_s0 + $0xe8] sm:$0xff]  ;;  %v52_v10 = vld [vmem:[%s1103_s0 + $0xf8] sm:$0xff] }
  0x14   :  { %326 = vmatpush.msra.mxu1 %v309_v17  ;;  %657 = vmatpush.msra.mxu2 %v309_v17 }
  0x15   :  { %658 = vmatpush.msrb.mxu3 %v309_v17 }
  0x16   :  { %327 = vmatpush.msra.mxu1 %v308_v19  ;;  %659 = vmatpush.msra.mxu2 %v308_v19 }
  0x17   :  { %630 = vmatmul.msk.f32.vlgmr.msra.gmra.mxu3 %vm58_vm0, %v39_v21 }
  0x18   :  { %328 = vmatpush.msra.mxu1 %v307_v20  ;;  %661 = vmatpush.msra.mxu2 %v307_v20 }
  0x19   :  { %660 = vmatpush.msrb.mxu3 %v308_v19 }
  0x1a   :  { %329 = vmatpush.msra.mxu1 %v306_v22  ;;  %663 = vmatpush.msra.mxu2 %v306_v22 }
  0x1b   :  { %615 = vmatmul.msk.f32.gmra.mxu0 %vm58_vm0, %v24_v4  ;;  %662 = vmatpush.msrb.mxu3 %v307_v20 }
  0x1c   :  { %330 = vmatpush.msra.mxu1 %v305_v23  ;;  %665 = vmatpush.msra.mxu2 %v305_v23 }
  0x1d   :  { %664 = vmatpush.msrb.mxu3 %v306_v22 }
  0x1e   :  { %331 = vmatpush.msra.mxu1 %v304_v25  ;;  %667 = vmatpush.msra.mxu2 %v304_v25 }
  0x1f   :  { %666 = vmatpush.msrb.mxu3 %v305_v23 }
  0x20   :  { %332 = vmatpush.msra.mxu1 %v303_v26  ;;  %669 = vmatpush.msra.mxu2 %v303_v26 }
  0x21   :  { %668 = vmatpush.msrb.mxu3 %v304_v25 }
  0x22   :  { %333 = vmatpush.msra.mxu1 %v302_v27  ;;  %671 = vmatpush.msra.mxu2 %v302_v27 }
  0x23   :  { %616 = vmatmul.msk.f32.gmra.mxu0 %vm58_vm0, %v25_v5  ;;  %631 = vmatmul.msk.f32.gmra.mxu3 %vm58_vm0, %v40_v29 }
  0x24   :  { %334 = vmatpush.msra.mxu1 %v301_v30  ;;  %673 = vmatpush.msra.mxu2 %v301_v30 }
  0x25   :  { %670 = vmatpush.msrb.mxu3 %v303_v26 }
  0x26   :  { %335 = vmatpush.msra.mxu1 %v300_v31  ;;  %675 = vmatpush.msra.mxu2 %v300_v31 }
  0x27   :  { %672 = vmatpush.msrb.mxu3 %v302_v27 }
  0x29   :  { %674 = vmatpush.msrb.mxu3 %v301_v30 }
  0x2b   :  { %617 = vmatmul.msk.f32.gmra.mxu0 %vm58_vm0, %v26_v6  ;;  %632 = vmatmul.msk.f32.gmra.mxu3 %vm58_vm0, %v41_v33  ;;  %v51_v6 = vld [vmem:[%s1103_s0 + $0xf0] sm:$0xff] }
  0x2c   :  { %676 = vmatpush.msrb.mxu3 %v300_v31 }
  0x33   :  { %618 = vmatmul.msk.f32.gmra.mxu0 %vm58_vm0, %v27_v7  ;;  %633 = vmatmul.msk.f32.gmra.mxu3 %vm58_vm0, %v42_v35  ;;  %v433_v35 = vlaneseq }
  0x3b   :  { %619 = vmatmul.msk.f32.gmra.mxu0 %vm58_vm0, %v28_v8  ;;  %634 = vmatmul.msk.f32.gmra.mxu3 %vm58_vm0, %v43_v37 }
  0x43   :  { %620 = vmatmul.msk.f32.gmra.mxu0 %vm58_vm0, %v29_v9  ;;  %635 = vmatmul.msk.f32.gmra.mxu3 %vm58_vm0, %v44_v41 }
  0x4b   :  { %621 = vmatmul.msk.f32.gmra.mxu0 %vm58_vm0, %v30_v13  ;;  %636 = vmatmul.msk.f32.gmra.mxu3 %vm58_vm0, %v45_v46 }
  0x53   :  { %622 = vmatmul.msk.f32.gmra.mxu0 %vm58_vm0, %v31_v18  ;;  %637 = vmatmul.msk.f32.gmra.mxu3 %vm58_vm0, %v46_v50 }
  0x5b   :  { %623 = vmatmul.msk.f32.gmra.mxu0 %vm58_vm0, %v32_v24  ;;  %638 = vmatmul.msk.f32.gmra.mxu3 %vm58_vm0, %v47_v54  ;;  %v951_v54 = vld [vmem:[%s1107_s4] ss:$0 sm:$0xff]  ;;  %s706_s4 = smov [#allocation2]  }
  0x5c   :  { %s601_s12 = sshll.u32 %s706_s4, 4  ;;  %s602_s12 = int_to_ptr.vmem [resolvable:$true] %s601_s12 }
  0x63   :  { %624 = vmatmul.msk.f32.gmra.mxu0 %vm58_vm0, %v33_v28  ;;  %639 = vmatmul.msk.f32.gmra.mxu3 %vm58_vm0, %v48_v58 }
  0x6b   :  { %625 = vmatmul.msk.f32.gmra.mxu0 %vm58_vm0, %v34_v32  ;;  %640 = vmatmul.msk.f32.gmra.mxu3 %vm58_vm0, %v49_v62 }
  0x73   :  { %626 = vmatmul.msk.f32.gmra.mxu0 %vm58_vm0, %v35_v34  ;;  %641 = vmatmul.msk.f32.gmra.mxu3 %vm58_vm0, %v50_v2 }
  0x7b   :  { %627 = vmatmul.msk.f32.gmra.mxu0 %vm58_vm0, %v36_v36  ;;  %642 = vmatmul.msk.f32.gmra.mxu3 %vm58_vm0, %v51_v6 }
  0x80   :  { %v172_v39 = vpop.f32.mrf.mxu0 }
  0x81   :  { %v173_v42 = vadd.f32 %v875_v38, %v172_v39  ;;  %v434_v39 = vshrl.u32 %v433_v35, 7 }
  0x83   :  { %v268_v43 = vmax.f32 %v173_v42, 0.0  ;;  %628 = vmatmul.msk.f32.gmra.mxu0 %vm58_vm0, %v37_v40  ;;  %643 = vmatmul.msk.f32.gmra.mxu3 %vm58_vm0, %v52_v10  ;;  %v435_v41 = vadd.s32 8, %v434_v39 }
  0x85   :  { %336 = vmatmul.f32.vlgmr.msra.gmra.mxu1 %v268_v43  ;;  %v440_v43 = vmul.u32 4, %v434_v39 }
  0x88   :  { %v175_v44 = vpop.f32.mrf.mxu0 }
  0x89   :  { %v176_v47 = vadd.f32 %v875_v38, %v175_v44  ;;  %v441_v44 = vmul.u32 4, %v435_v41 }
  0x8b   :  { %v269_v48 = vmax.f32 %v176_v47, 0.0  ;;  %629 = vmatmul.msk.f32.gmra.mxu0 %vm58_vm0, %v38_v45  ;;  %vm586_vm0 = vcmask 1044484  }
  0x8d   :  { %339 = vmatmul.f32.gmra.mxu1 %v269_v48  ;;  %v439_v48 = vand.u32 127, %v433_v35 }
  0x8f   :  { %vm444_vm1 = vcmp.ge.s32.totalorder %v439_v48, %v440_v43  ;;  %vm445_vm3 = vcmp.ge.s32.totalorder %v439_v48, %v441_v44 }
  0x90   :  { %v178_v49 = vpop.f32.mrf.mxu0 }
  0x91   :  { %v179_v51 = vadd.f32 %v875_v38, %v178_v49  ;;  %v448_v49 = vadd.s32 4, %v440_v43 }
  0x93   :  { %v270_v52 = vmax.f32 %v179_v51, 0.0  ;;  %v449_v51 = vadd.s32 4, %v441_v44  ;;  %vm452_vm2 = vcmp.lt.s32.totalorder %v439_v48, %v448_v49 }
  0x94   :  { %vm954_vm5 = vmand %vm444_vm1, %vm452_vm2  ;;  %vm588_vm1 = vcmask 1045509   ;;  %vm590_vm2 = vcmask 1046534  }
  0x95   :  { %342 = vmatmul.f32.gmra.mxu1 %v270_v52  ;;  %v436_v52 = vadd.s32 16, %v434_v39  ;;  %vm453_vm4 = vcmp.lt.s32.totalorder %v439_v48, %v449_v51 }
  0x96   :  { %vm959_vm6 = vmand %vm445_vm3, %vm453_vm4  ;;  %vm592_vm3 = vcmask 1047559  }
  0x98   :  { %v181_v53 = vpop.f32.mrf.mxu0 }
  0x99   :  { %v182_v55 = vadd.f32 %v875_v38, %v181_v53 }
  0x9a   :  { %v226_v22 = vpop.f32.mrf.mxu3 }
  0x9b   :  { %v271_v56 = vmax.f32 %v182_v55, 0.0  ;;  %v442_v55 = vmul.u32 4, %v436_v52  ;;  %v227_v6 = vadd.f32 %v875_v38, %v226_v22 }
  0x9d   :  { %345 = vmatmul.f32.gmra.mxu1 %v271_v56  ;;  %vm446_vm7 = vcmp.ge.s32.totalorder %v439_v48, %v442_v55  ;;  %v286_v10 = vmax.f32 %v227_v6, 0.0 }
  0xa0   :  { %v184_v57 = vpop.f32.mrf.mxu0 }
  0xa1   :  { %v185_v59 = vadd.f32 %v875_v38, %v184_v57 }
  0xa3   :  { %v272_v60 = vmax.f32 %v185_v59, 0.0 }
  0xa5   :  { %348 = vmatmul.f32.gmra.mxu1 %v272_v60 }
  0xa6   :  { %v934_v26 = vpop.f32.mrf.mxu3 }
  0xa8   :  { %v187_v61 = vpop.f32.mrf.mxu0 }
  0xa9   :  { %v188_v63 = vadd.f32 %v875_v38, %v187_v61 }
  0xab   :  { %v273_v0 = vmax.f32 %v188_v63, 0.0 }
  0xad   :  { %351 = vmatmul.f32.gmra.mxu1 %v273_v0  ;;  %v450_v0 = vadd.s32 4, %v442_v55 }
  0xae   :  { %v937_v30 = vpop.f32.mrf.mxu3 }
  0xaf   :  { %vm454_vm8 = vcmp.lt.s32.totalorder %v439_v48, %v450_v0 }
  0xb0   :  { %v190_v1 = vpop.f32.mrf.mxu0  ;;  %vm971_vm9 = vmand %vm446_vm7, %vm454_vm8 }
  0xb1   :  { %v191_v3 = vadd.f32 %v875_v38, %v190_v1  ;;  %v437_v1 = vadd.s32 24, %v434_v39 }
  0xb3   :  { %v274_v4 = vmax.f32 %v191_v3, 0.0 }
  0xb5   :  { %354 = vmatmul.f32.gmra.mxu1 %v274_v4 }
  0xb6   :  { %v940_v34 = vpop.f32.mrf.mxu3 }
  0xb8   :  { %v193_v5 = vpop.f32.mrf.mxu0 }
  0xb9   :  { %v194_v7 = vadd.f32 %v875_v38, %v193_v5 }
  0xbb   :  { %v275_v8 = vmax.f32 %v194_v7, 0.0  ;;  %v443_v7 = vmul.u32 4, %v437_v1 }
  0xbd   :  { %357 = vmatmul.f32.gmra.mxu1 %v275_v8  ;;  %vm447_vm10 = vcmp.ge.s32.totalorder %v439_v48, %v443_v7 }
  0xbe   :  { %v943_v42 = vpop.f32.mrf.mxu3 }
  0xc0   :  { %v196_v9 = vpop.f32.mrf.mxu0 }
  0xc1   :  { %v197_v11 = vadd.f32 %v875_v38, %v196_v9 }
  0xc3   :  { %v276_v12 = vmax.f32 %v197_v11, 0.0 }
  0xc5   :  { %360 = vmatmul.f32.gmra.mxu1 %v276_v12  ;;  %v451_v12 = vadd.s32 4, %v443_v7 }
  0xc6   :  { %v946_v53 = vpop.f32.mrf.mxu3 }
  0xc7   :  { %vm455_vm11 = vcmp.lt.s32.totalorder %v439_v48, %v451_v12  ;;  %v242_v43 = vadd.f32 %v875_v38, %v946_v53 }
  0xc8   :  { %v199_v13 = vpop.f32.mrf.mxu0  ;;  %vm982_vm12 = vmand %vm447_vm10, %vm455_vm11 }
  0xc9   :  { %v200_v14 = vadd.f32 %v875_v38, %v199_v13 }
  0xcb   :  { %v277_v15 = vmax.f32 %v200_v14, 0.0 }
  0xcd   :  { %363 = vmatmul.f32.gmra.mxu1 %v277_v15 }
  0xce   :  { %v964_v2 = vpop.f32.mrf.mxu3 }
  0xd0   :  { %v202_v16 = vpop.f32.mrf.mxu0 }
  0xd1   :  { %v203_v17 = vadd.f32 %v875_v38, %v202_v16  ;;  %v230_v16 = vadd.f32 %v875_v38, %v934_v26 }
  0xd3   :  { %v278_v18 = vmax.f32 %v203_v17, 0.0 }
  0xd5   :  { %366 = vmatmul.f32.gmra.mxu1 %v278_v18 }
  0xd6   :  { %v976_v13 = vpop.f32.mrf.mxu3 }
  0xd8   :  { %v205_v19 = vpop.f32.mrf.mxu0 }
  0xd9   :  { %v206_v20 = vadd.f32 %v875_v38, %v205_v19  ;;  %v287_v19 = vmax.f32 %v230_v16, 0.0 }
  0xdb   :  { %v279_v21 = vmax.f32 %v206_v20, 0.0 }
  0xdd   :  { %369 = vmatmul.f32.gmra.mxu1 %v279_v21 }
  0xde   :  { %v987_v21 = vpop.f32.mrf.mxu3 }
  0xe0   :  { %v208_v23 = vpop.f32.mrf.mxu0 }
  0xe1   :  { %v209_v24 = vadd.f32 %v875_v38, %v208_v23 }
  0xe3   :  { %v280_v25 = vmax.f32 %v209_v24, 0.0  ;;  %v233_v24 = vadd.f32 %v875_v38, %v937_v30 }
  0xe5   :  { %372 = vmatmul.f32.gmra.mxu1 %v280_v25  ;;  %v288_v26 = vmax.f32 %v233_v24, 0.0 }
  0xe8   :  { %v211_v27 = vpop.f32.mrf.mxu0 }
  0xe9   :  { %v212_v28 = vadd.f32 %v875_v38, %v211_v27  ;;  %v993_v27 = vpop.f32.mrf.mxu3 }
  0xeb   :  { %v281_v29 = vmax.f32 %v212_v28, 0.0  ;;  %v236_v28 = vadd.f32 %v875_v38, %v940_v34 }
  0xed   :  { %375 = vmatmul.f32.gmra.mxu1 %v281_v29 }
  0xf0   :  { %v214_v31 = vpop.f32.mrf.mxu0 }
  0xf1   :  { %v215_v32 = vadd.f32 %v875_v38, %v214_v31  ;;  %v289_v31 = vmax.f32 %v236_v28, 0.0 }
  0xf3   :  { %v282_v33 = vmax.f32 %v215_v32, 0.0  ;;  %v256_v32 = vpop.f32.mrf.mxu3 }
  0xf5   :  { %378 = vmatmul.f32.vlgmr.msra.gmra.mxu2 %v282_v33  ;;  %v239_v33 = vadd.f32 %v875_v38, %v943_v42 }
  0xf8   :  { %v217_v36 = vpop.f32.mrf.mxu0 }
  0xf9   :  { %v218_v37 = vadd.f32 %v875_v38, %v217_v36  ;;  %v290_v36 = vmax.f32 %v239_v33, 0.0 }
  0xfb   :  { %v283_v40 = vmax.f32 %v218_v37, 0.0  ;;  %v259_v30 = vpop.f32.mrf.mxu3 }
  0xfc   :  { %v260_v41 = vadd.f32 %v875_v38, %v259_v30 }
  0xfd   :  { %381 = vmatmul.f32.gmra.mxu2 %v283_v40 }
  0xfe   :  { %v297_v42 = vmax.f32 %v260_v41, 0.0 }
 0x100   :  { %v220_v45 = vpop.f32.mrf.mxu0  ;;  %423 = vmatmul.f32.vlgmr.msrb.gmra.mxu3 %v297_v42 }
 0x101   :  { %v221_v46 = vadd.f32 %v875_v38, %v220_v45 }
 0x102   :  { %v337_v47 = vpop.f32.mrf.mxu1 }
 0x103   :  { %v284_v50 = vmax.f32 %v221_v46, 0.0  ;;  %v338_v57 = vadd.f32 %v951_v54, %v337_v47  ;;  %v262_v55 = vpop.f32.mrf.mxu3 }
 0x105   :  { %384 = vmatmul.f32.gmra.mxu2 %v284_v50  ;;  %v468_v3 = vsel %vm954_vm5, %v338_v57, 0.0  ;;  %v291_v50 = vmax.f32 %v242_v43, 0.0 }
 0x108   :  { %v223_v56 = vpop.f32.mrf.mxu0 }
 0x109   :  { %v224_v59 = vadd.f32 %v875_v38, %v223_v56  ;;  %v263_v56 = vadd.f32 %v875_v38, %v262_v55 }
 0x10a   :  { %v340_v60 = vpop.f32.mrf.mxu1 }
 0x10b   :  { %v285_v62 = vmax.f32 %v224_v59, 0.0  ;;  %v341_v63 = vadd.f32 %v951_v54, %v340_v60  ;;  %v245_v60 = vadd.f32 %v875_v38, %v964_v2  ;;  %v265_v6 = vpop.f32.mrf.mxu3 }
 0x10c   :  { %v266_v7 = vadd.f32 %v875_v38, %v265_v6 }
 0x10d   :  { %v469_v4 = vsel %vm959_vm6, %v341_v63, 0.0  ;;  %387 = vmatmul.f32.gmra.mxu2 %v285_v62  ;;  %v298_v62 = vmax.f32 %v263_v56, 0.0 }
 0x10e   :  { %v500_v5 = vadd.f32 %v469_v4, %v468_v3  ;;  %v292_v3 = vmax.f32 %v245_v60, 0.0  ;;  %v299_v12 = vmax.f32 %v266_v7, 0.0 }
 0x10f   :  { %426 = vmatmul.f32.gmra.mxu3 %v298_v62 }
 0x112   :  { %v343_v8 = vpop.f32.mrf.mxu1 }
 0x113   :  { %v344_v11 = vadd.f32 %v951_v54, %v343_v8 }
 0x115   :  { %v470_v14 = vsel %vm971_vm9, %v344_v11, 0.0  ;;  %390 = vmatmul.f32.gmra.mxu2 %v286_v10  ;;  %v248_v11 = vadd.f32 %v875_v38, %v976_v13 }
 0x116   :  { %v501_v15 = vadd.f32 %v500_v5, %v470_v14 }
 0x117   :  { %429 = vmatmul.f32.gmra.mxu3 %v299_v12  ;;  %v293_v16 = vmax.f32 %v248_v11, 0.0 }
 0x11a   :  { %v346_v17 = vpop.f32.mrf.mxu1 }
 0x11b   :  { %v347_v20 = vadd.f32 %v951_v54, %v346_v17 }
 0x11d   :  { %v471_v22 = vsel %vm982_vm12, %v347_v20, 0.0  ;;  %393 = vmatmul.f32.gmra.mxu2 %v287_v19  ;;  %v251_v20 = vadd.f32 %v875_v38, %v987_v21 }
 0x11e   :  { %v502_v23 = vadd.f32 %v501_v15, %v471_v22 }
 0x11f   :  { %v294_v22 = vmax.f32 %v251_v20, 0.0 }
 0x120   :  { %v503_v34 = vrot.slane %v502_v23, 4 }
 0x122   :  { %v349_v25 = vpop.f32.mrf.mxu1  ;;  %v504_v47 = vadd.f32 %v503_v34, %v502_v23  ;;  %v254_v23 = vadd.f32 %v875_v38, %v993_v27 }
 0x123   :  { %v350_v39 = vadd.f32 %v951_v54, %v349_v25  ;;  %v257_v25 = vadd.f32 %v875_v38, %v256_v32 }
 0x124   :  { %v505_v57 = vrot.slane %v504_v47, 2  ;;  %v295_v13 = vmax.f32 %v254_v23, 0.0 }
 0x125   :  { %396 = vmatmul.f32.gmra.mxu2 %v288_v26  ;;  %v472_v45 = vsel %vm954_vm5, %v350_v39, 0.0  ;;  %v296_v28 = vmax.f32 %v257_v25, 0.0 }
 0x126   :  { %v506_v0 = vadd.f32 %v505_v57, %v504_v47 }
 0x128   :  { %v507_v8 = vrot.slane %v506_v0, 1 }
 0x12a   :  { %v352_v29 = vpop.f32.mrf.mxu1  ;;  %v508_v2 = vadd.f32 %v507_v8, %v506_v0 }
 0x12b   :  { %v353_v37 = vadd.f32 %v951_v54, %v352_v29 }
 0x12d   :  { %399 = vmatmul.f32.gmra.mxu2 %v289_v31  ;;  %v473_v44 = vsel %vm959_vm6, %v353_v37, 0.0 }
 0x12e   :  { %v509_v48 = vadd.f32 %v473_v44, %v472_v45 }
 0x132   :  { %v355_v35 = vpop.f32.mrf.mxu1 }
 0x133   :  { %v356_v40 = vadd.f32 %v951_v54, %v355_v35 }
 0x135   :  { %402 = vmatmul.f32.gmra.mxu2 %v290_v36  ;;  %v474_v46 = vsel %vm971_vm9, %v356_v40, 0.0 }
 0x136   :  { %v510_v52 = vadd.f32 %v509_v48, %v474_v46 }
 0x13a   :  { %v358_v49 = vpop.f32.mrf.mxu1 }
 0x13b   :  { %v359_v51 = vadd.f32 %v951_v54, %v358_v49 }
 0x13d   :  { %v475_v53 = vsel %vm982_vm12, %v359_v51, 0.0  ;;  %405 = vmatmul.f32.gmra.mxu2 %v291_v50 }
 0x13e   :  { %v511_v59 = vadd.f32 %v510_v52, %v475_v53 }
 0x140   :  { %v512_v63 = vrot.slane %v511_v59, 4 }
 0x142   :  { %v513_v1 = vadd.f32 %v512_v63, %v511_v59  ;;  %v361_v5 = vpop.f32.mrf.mxu1 }
 0x143   :  { %v362_v31 = vadd.f32 %v951_v54, %v361_v5 }
 0x144   :  { %v514_v4 = vrot.slane %v513_v1, 2 }
 0x145   :  { %408 = vmatmul.f32.gmra.mxu2 %v292_v3  ;;  %v476_v36 = vsel %vm954_vm5, %v362_v31, 0.0 }
 0x146   :  { %v515_v10 = vadd.f32 %v514_v4, %v513_v1 }
 0x148   :  { %v516_v14 = vrot.slane %v515_v10, 1 }
 0x14a   :  { %v517_v15 = vadd.f32 %v516_v14, %v515_v10  ;;  %v364_v19 = vpop.f32.mrf.mxu1 }
 0x14b   :  { %v365_v29 = vadd.f32 %v951_v54, %v364_v19 }
 0x14c   :  { %v581_v17 = vsel %vm580_vm13, %v517_v15, %v508_v2 }
 0x14d   :  { %411 = vmatmul.f32.gmra.mxu2 %v293_v16  ;;  %v477_v35 = vsel %vm959_vm6, %v365_v29, 0.0 }
 0x14e   :  { %v518_v32 = vadd.f32 %v477_v35, %v476_v36 }
 0x152   :  { %v367_v24 = vpop.f32.mrf.mxu1 }
 0x153   :  { %v368_v33 = vadd.f32 %v951_v54, %v367_v24 }
 0x155   :  { %414 = vmatmul.f32.gmra.mxu2 %v294_v22  ;;  %v478_v38 = vsel %vm971_vm9, %v368_v33, 0.0 }
 0x156   :  { %v519_v30 = vadd.f32 %v518_v32, %v478_v38 }
 0x15a   :  { %v370_v26 = vpop.f32.mrf.mxu1 }
 0x15b   :  { %v371_v27 = vadd.f32 %v951_v54, %v370_v26 }
 0x15d   :  { %417 = vmatmul.f32.gmra.mxu2 %v295_v13  ;;  %v479_v37 = vsel %vm982_vm12, %v371_v27, 0.0 }
 0x15e   :  { %v520_v39 = vadd.f32 %v519_v30, %v479_v37 }
 0x160   :  { %v521_v34 = vrot.slane %v520_v39, 4 }
 0x162   :  { %v373_v21 = vpop.f32.mrf.mxu1  ;;  %v522_v45 = vadd.f32 %v521_v34, %v520_v39 }
 0x163   :  { %v374_v44 = vadd.f32 %v951_v54, %v373_v21 }
 0x164   :  { %v523_v51 = vrot.slane %v522_v45, 2 }
 0x165   :  { %420 = vmatmul.f32.gmra.mxu2 %v296_v28  ;;  %v480_v47 = vsel %vm954_vm5, %v374_v44, 0.0 }
 0x166   :  { %v524_v57 = vadd.f32 %v523_v51, %v522_v45 }
 0x168   :  { %v525_v63 = vrot.slane %v524_v57, 1 }
 0x16a   :  { %v376_v40 = vpop.f32.mrf.mxu1  ;;  %v526_v3 = vadd.f32 %v525_v63, %v524_v57 }
 0x16b   :  { %v377_v43 = vadd.f32 %v951_v54, %v376_v40 }
 0x16c   :  { %v583_v8 = vsel %vm582_vm14, %v526_v3, %v581_v17 }
 0x16d   :  { %v481_v46 = vsel %vm959_vm6, %v377_v43, 0.0 }
 0x16e   :  { %v527_v49 = vadd.f32 %v481_v46, %v480_v47 }
 0x178   :  { %v379_v41 = vpop.f32.mrf.mxu2 }
 0x179   :  { %v380_v42 = vadd.f32 %v951_v54, %v379_v41 }
 0x17b   :  { %v482_v48 = vsel %vm971_vm9, %v380_v42, 0.0 }
 0x17c   :  { %v528_v55 = vadd.f32 %v527_v49, %v482_v48 }
 0x180   :  { %v382_v50 = vpop.f32.mrf.mxu2 }
 0x181   :  { %v383_v52 = vadd.f32 %v951_v54, %v382_v50 }
 0x183   :  { %v483_v53 = vsel %vm982_vm12, %v383_v52, 0.0  ;;  %v424_v37 = vpop.f32.mrf.mxu3 }
 0x184   :  { %v529_v56 = vadd.f32 %v528_v55, %v483_v53 }
 0x186   :  { %v530_v59 = vrot.slane %v529_v56, 4 }
 0x188   :  { %v531_v60 = vadd.f32 %v530_v59, %v529_v56  ;;  %v385_v62 = vpop.f32.mrf.mxu2 }
 0x189   :  { %v386_v5 = vadd.f32 %v951_v54, %v385_v62 }
 0x18a   :  { %v532_v0 = vrot.slane %v531_v60, 2 }
 0x18b   :  { %v484_v12 = vsel %vm954_vm5, %v386_v5, 0.0  ;;  %v425_v5 = vadd.f32 %v951_v54, %v424_v37 }
 0x18c   :  { %v533_v1 = vadd.f32 %v532_v0, %v531_v60 }
 0x18e   :  { %v534_v4 = vrot.slane %v533_v1, 1 }
 0x190   :  { %v535_v6 = vadd.f32 %v534_v4, %v533_v1  ;;  %v388_v7 = vpop.f32.mrf.mxu2 }
 0x191   :  { %v389_v10 = vadd.f32 %v951_v54, %v388_v7 }
 0x192   :  { %v585_v11 = vsel %vm584_vm15, %v535_v6, %v583_v8  ;;  %v427_v49 = vpop.f32.mrf.mxu3 }
 0x193   :  { %v485_v14 = vsel %vm959_vm6, %v389_v10, 0.0  ;;  %v428_v10 = vadd.f32 %v951_v54, %v427_v49 }
 0x194   :  { %v536_v2 = vadd.f32 %v485_v14, %v484_v12  ;;  %v497_v14 = vsel %vm959_vm6, %v425_v5, 0.0 }
 0x198   :  { %v391_v15 = vpop.f32.mrf.mxu2 }
 0x199   :  { %v392_v16 = vadd.f32 %v951_v54, %v391_v15 }
 0x19a   :  { %v430_v4 = vpop.f32.mrf.mxu3 }
 0x19b   :  { %v486_v19 = vsel %vm971_vm9, %v392_v16, 0.0  ;;  %v431_v12 = vadd.f32 %v951_v54, %v430_v4 }
 0x19c   :  { %v537_v20 = vadd.f32 %v536_v2, %v486_v19 }
 0x1a0   :  { %v394_v22 = vpop.f32.mrf.mxu2 }
 0x1a1   :  { %v395_v17 = vadd.f32 %v951_v54, %v394_v22  ;;  %v499_v22 = vsel %vm982_vm12, %v431_v12, 0.0 }
 0x1a3   :  { %v487_v23 = vsel %vm982_vm12, %v395_v17, 0.0 }
 0x1a4   :  { %v538_v24 = vadd.f32 %v537_v20, %v487_v23  ;;  %v498_v20 = vsel %vm971_vm9, %v428_v10, 0.0 }
 0x1a6   :  { %v539_v13 = vrot.slane %v538_v24, 4 }
 0x1a8   :  { %v540_v25 = vadd.f32 %v539_v13, %v538_v24  ;;  %v397_v26 = vpop.f32.mrf.mxu2 }
 0x1a9   :  { %v398_v39 = vadd.f32 %v951_v54, %v397_v26 }
 0x1aa   :  { %v541_v28 = vrot.slane %v540_v25, 2 }
 0x1ab   :  { %v488_v42 = vsel %vm954_vm5, %v398_v39, 0.0 }
 0x1ac   :  { %v542_v29 = vadd.f32 %v541_v28, %v540_v25 }
 0x1ae   :  { %v543_v31 = vrot.slane %v542_v29, 1 }
 0x1b0   :  { %v544_v33 = vadd.f32 %v543_v31, %v542_v29  ;;  %v400_v21 = vpop.f32.mrf.mxu2 }
 0x1b1   :  { %v401_v30 = vadd.f32 %v951_v54, %v400_v21 }
 0x1b2   :  { %v1061_v35 = vsel %vm586_vm0, %v544_v33, %v585_v11 }
 0x1b3   :  { %v489_v34 = vsel %vm959_vm6, %v401_v30, 0.0 }
 0x1b4   :  { %v545_v48 = vadd.f32 %v489_v34, %v488_v42 }
 0x1b8   :  { %v403_v27 = vpop.f32.mrf.mxu2 }
 0x1b9   :  { %v404_v40 = vadd.f32 %v951_v54, %v403_v27 }
 0x1bb   :  { %v490_v45 = vsel %vm971_vm9, %v404_v40, 0.0 }
 0x1bc   :  { %v546_v52 = vadd.f32 %v545_v48, %v490_v45 }
 0x1c0   :  { %v406_v36 = vpop.f32.mrf.mxu2 }
 0x1c1   :  { %v407_v43 = vadd.f32 %v951_v54, %v406_v36 }
 0x1c3   :  { %v491_v50 = vsel %vm982_vm12, %v407_v43, 0.0 }
 0x1c4   :  { %v547_v56 = vadd.f32 %v546_v52, %v491_v50 }
 0x1c6   :  { %v548_v0 = vrot.slane %v547_v56, 4 }
 0x1c8   :  { %v409_v38 = vpop.f32.mrf.mxu2  ;;  %v549_v6 = vadd.f32 %v548_v0, %v547_v56 }
 0x1c9   :  { %v410_v46 = vadd.f32 %v951_v54, %v409_v38 }
 0x1ca   :  { %v550_v15 = vrot.slane %v549_v6, 2 }
 0x1cb   :  { %v492_v55 = vsel %vm954_vm5, %v410_v46, 0.0 }
 0x1cc   :  { %v551_v23 = vadd.f32 %v550_v15, %v549_v6 }
 0x1ce   :  { %v552_v25 = vrot.slane %v551_v23, 1 }
 0x1d0   :  { %v412_v32 = vpop.f32.mrf.mxu2  ;;  %v553_v58 = vadd.f32 %v552_v25, %v551_v23 }
 0x1d1   :  { %v413_v44 = vadd.f32 %v951_v54, %v412_v32 }
 0x1d2   :  { %v589_v18 = vsel %vm588_vm1, %v553_v58, %v1061_v35 }
 0x1d3   :  { %v493_v51 = vsel %vm959_vm6, %v413_v44, 0.0 }
 0x1d4   :  { %v554_v57 = vadd.f32 %v493_v51, %v492_v55 }
 0x1d8   :  { %v415_v41 = vpop.f32.mrf.mxu2 }
 0x1d9   :  { %v416_v47 = vadd.f32 %v951_v54, %v415_v41 }
 0x1db   :  { %v494_v53 = vsel %vm971_vm9, %v416_v47, 0.0 }
 0x1dc   :  { %v555_v62 = vadd.f32 %v554_v57, %v494_v53 }
 0x1e0   :  { %v418_v59 = vpop.f32.mrf.mxu2 }
 0x1e1   :  { %v419_v60 = vadd.f32 %v951_v54, %v418_v59 }
 0x1e3   :  { %v495_v63 = vsel %vm982_vm12, %v419_v60, 0.0 }
 0x1e4   :  { %v556_v1 = vadd.f32 %v555_v62, %v495_v63 }
 0x1e6   :  { %v557_v3 = vrot.slane %v556_v1, 4 }
 0x1e8   :  { %v421_v7 = vpop.f32.mrf.mxu2  ;;  %v558_v8 = vadd.f32 %v557_v3, %v556_v1 }
 0x1e9   :  { %v422_v11 = vadd.f32 %v951_v54, %v421_v7 }
 0x1ea   :  { %v559_v19 = vrot.slane %v558_v8, 2 }
 0x1eb   :  { %v496_v2 = vsel %vm954_vm5, %v422_v11, 0.0 }
 0x1ec   :  { %v563_v16 = vadd.f32 %v497_v14, %v496_v2  ;;  %v560_v13 = vadd.f32 %v559_v19, %v558_v8 }
 0x1ee   :  { %v564_v17 = vadd.f32 %v563_v16, %v498_v20  ;;  %v561_v26 = vrot.slane %v560_v13, 1 }
 0x1f0   :  { %v565_v24 = vadd.f32 %v564_v17, %v499_v22  ;;  %v562_v31 = vadd.f32 %v561_v26, %v560_v13 }
 0x1f2   :  { %v566_v54 = vrot.slane %v565_v24, 4  ;;  %v591_v21 = vsel %vm590_vm2, %v562_v31, %v589_v18 }
 0x1f4   :  { %v567_v61 = vadd.f32 %v566_v54, %v565_v24 }
 0x1f6   :  { %v568_v28 = vrot.slane %v567_v61, 2 }
 0x1f8   :  { %v569_v29 = vadd.f32 %v568_v28, %v567_v61 }
 0x1fa   :  { %v570_v33 = vrot.slane %v569_v29, 1 }
 0x1fc   :  { %v571_v9 = vadd.f32 %v570_v33, %v569_v29 }
 0x1fe   :  { %v593_v27 = vsel %vm592_vm3, %v571_v9, %v591_v21 }
 0x1ff   :  { %595 = vst [vmem:[#allocation2] sm:$0xff] %v593_v27 }
 0x200   :  { %606 = dma.vmem_to_hbm [thread:$0]  %s602_s12, 128, %s604_s15, [#allocation3]  }
 0x201   :  { %704 = dma.done.wait [#allocation3], 128  }
 0x202   :  { %705 = vsyncadd [#allocation3], 4294967168 }
 0x203   :  { %611 = vsyncpa [#allocation3], 1 }

</bundles_post_ra>
